<compile_context>
chip_gen: v6e
topology: v6e:2x2x1
jax: 0.10.0
libtpu: 0.0.40
codegen_flags: <defaults>
</compile_context>

<pallas_src>
import math

import jax
import jax.numpy as jnp
from jax import lax
from jax.experimental import pallas as pl
from jax.experimental.pallas import tpu as pltpu


def _rup(x: int, m: int) -> int:
    return ((x + m - 1) // m) * m


def _chip_info():
    """Best-effort (per-core VMEM capacity bytes, is_multi_tensorcore_chip)."""
    kind = ""
    try:
        kind = jax.devices()[0].device_kind.lower()
    except Exception:
        pass
    multi_tc = "v7" in kind  # v7x: 2 TensorCores / chip, 64 MiB VMEM per core
    cap_guess = (64 << 20) if multi_tc else (128 << 20)
    cap = None
    try:
        cap = int(pltpu.get_tpu_info().vmem_capacity_bytes)
    except Exception:
        cap = None
    if not cap or cap <= 0:
        cap = cap_guess
    # Never assume more than the per-core guess (guards against a whole-chip report).
    cap = min(cap, cap_guess)
    return cap, multi_tc


def _choose_seq_tiles(S: int, vmem_cap: int):
    """Pick an equal Q/KV sequence tile and the (possibly padded) sequence length."""
    # On 128-MiB-VMEM chips (v5e/v6e) prefer bigger tiles to cut the K/V re-stream factor.
    pref = 1024 if vmem_cap > (96 << 20) else 512
    if S <= pref:
        return S, S
    for t in (1024, 512, 256, 128):
        if t <= pref and S % t == 0:
            return t, S
    # S > pref and no 128-multiple tile divides it: pad S to a 128 multiple and mask
    # the padded key columns in-kernel (replaces the old monolithic-block fallback).
    s_pad = _rup(S, 128)
    for t in (1024, 512, 256, 128):
        if t <= pref and s_pad % t == 0:
            return t, s_pad
    return 128, s_pad


def _per_step_vmem_bytes(G, tq, tk, D, itemsize, mask_mode, mask_itemsize, flash):
    """Conservative per-grid-step VMEM estimate: double-buffered I/O blocks, persistent
    scratch, and the compiler-materialized f32 (G, tq, tk) score/softmax temporaries."""
    d_pad = _rup(D, 128)
    tk_lane = _rup(tk, 128)
    tq_sub = _rup(tq, 8)
    tk_sub = _rup(tk, 8)
    io = 2 * 2 * G * tq_sub * d_pad * itemsize       # Q + O blocks, double-buffered
    io += 2 * 2 * G * tk_sub * d_pad * itemsize      # K + V blocks, double-buffered
    mask_b = 0
    if mask_mode in ("shared", "batch"):
        mask_b = 2 * tq_sub * tk_lane * mask_itemsize
    elif mask_mode in ("head", "full"):
        mask_b = 2 * G * tq_sub * tk_lane * mask_itemsize
    scratch = 0
    if flash:
        scratch = 2 * G * tq_sub * 128 * 4 + G * tq_sub * d_pad * 4   # m, l, acc
    temps = 3 * G * tq_sub * tk_lane * 4                              # s / masked s / p
    return io + mask_b + scratch + temps


def _pick_head_group(BH, H, per_step_fn, budget, *, require_divides_h, reserve_parallel):
    """Largest valid head-group size G that stays within the per-step VMEM budget."""
    limit = BH
    if reserve_parallel and BH > 1:
        limit = max(1, BH // 2)   # keep >= 2 parallel grid steps for 2-TensorCore chips
    best = 1
    for G in range(1, limit + 1):
        if BH % G:
            continue
        if require_divides_h and (H % G):
            continue
        if per_step_fn(G) <= budget:
            best = G
    return best


def _pad_last2(a, S, S_pad):
    if S_pad == S:
        return a
    pad = [(0, 0)] * (a.ndim - 2) + [(0, S_pad - S), (0, S_pad - S)]
    return jnp.pad(a, pad)


def _make_kernel(mask_mode, scale, flash, col_limit, tk, use_bf16_matmul):
    """Build the attention kernel body.

    mask_mode: None | "shared" (tq,tk) | "batch" (tq,tk) | "head" (G,tq,tk) | "full" (G,tq,tk)
    flash: multi-KV-tile online-softmax path (True) vs single-tile direct-softmax path.
    col_limit: real sequence length S when the KV axis was padded, else None.
    """

    def kernel(*refs):
        if mask_mode is None:
            if flash:
                q_ref, k_ref, v_ref, o_ref, m_scr, l_scr, acc_scr = refs
            else:
                q_ref, k_ref, v_ref, o_ref = refs
            mask_ref = None
        else:
            if flash:
                q_ref, k_ref, v_ref, mask_ref, o_ref, m_scr, l_scr, acc_scr = refs
            else:
                q_ref, k_ref, v_ref, mask_ref, o_ref = refs

        # Native-dtype MXU operands; 1/sqrt(d_k) folded into Q (S*D mults, not S*S).
        q = q_ref[...]
        q = q * jnp.asarray(scale, dtype=q.dtype)
        k = k_ref[...]
        v = v_ref[...]
        if use_bf16_matmul and q.dtype == jnp.float32:
            q = q.astype(jnp.bfloat16)
            k = k.astype(jnp.bfloat16)
            v = v.astype(jnp.bfloat16)

        # (G, tq, tk) scores; contraction over the last (D) dims -- no k.T relayout.
        s = jnp.einsum("gqd,gkd->gqk", q, k, preferred_element_type=jnp.float32)

        if mask_ref is not None:
            mblk = mask_ref[...].astype(jnp.float32)
            if mask_mode in ("shared", "batch"):
                s = s + mblk[None, :, :]        # (tq, tk) tile shared across the group
            else:
                s = s + mblk                    # (G, tq, tk) per-(b, h) tile

        if not flash:
            # --- Single-KV-tile fast path: plain row softmax, no running stats. ---
            m = jnp.max(s, axis=-1, keepdims=True)
            p = jnp.exp(s - m)
            l = jnp.sum(p, axis=-1, keepdims=True)
            pv = jnp.einsum("gqk,gkd->gqd", p.astype(v.dtype), v,
                            preferred_element_type=jnp.float32)
            inv = pl.reciprocal(l, approx=True)
            inv = inv * (2.0 - l * inv)          # one Newton step -> near-exact 1/l
            o_ref[...] = (pv * inv).astype(o_ref.dtype)
            return

        # --- Flash path: KV axis is grid axis 2 ("arbitrary"), online softmax. ---
        ki = pl.program_id(2)

        if col_limit is not None:
            # Sequence was padded to a 128 multiple; mask out padded key columns.
            col = ki * tk + lax.broadcasted_iota(jnp.int32, s.shape, 2)
            s = jnp.where(col < col_limit, s, -1e30)

        @pl.when(ki == 0)
        def _init():
            m_scr[...] = jnp.full_like(m_scr, -jnp.inf)
            l_scr[...] = jnp.zeros_like(l_scr)
            acc_scr[...] = jnp.zeros_like(acc_scr)

        m_prev = m_scr[...]
        m_new = jnp.maximum(m_prev, jnp.max(s, axis=-1, keepdims=True))
        alpha = jnp.exp(m_prev - m_new)
        p = jnp.exp(s - m_new)
        l_scr[...] = alpha * l_scr[...] + jnp.sum(p, axis=-1, keepdims=True)
        acc_scr[...] = alpha * acc_scr[...] + jnp.einsum(
            "gqk,gkd->gqd", p.astype(v.dtype), v, preferred_element_type=jnp.float32)
        m_scr[...] = m_new

        @pl.when(ki == pl.num_programs(2) - 1)
        def _finalize():
            l = l_scr[...]
            inv = pl.reciprocal(l, approx=True)
            inv = inv * (2.0 - l * inv)          # Newton refine (EUP + 2 small VPU ops)
            o_ref[...] = (acc_scr[...] * inv).astype(o_ref.dtype)

    return kernel


def scaled_dot_product_attention(q, k, v, mask=None, *, seq_tile=None,
                                 use_bf16_matmul=False):
    """Pallas implementation of ScaledDotProductAttention.forward (eval mode).

    q, k, v: [B, H, S, D] arrays (same dtype).
    mask: optional additive mask broadcastable to [B, H, S, S].
    seq_tile: optional explicit sequence tile (must divide S); mainly for testing.
    use_bf16_matmul: opt-in bf16 MXU feeds for f32 inputs (f32 accumulation kept).
    """
    B, H, S, D = q.shape
    BH = B * H
    itemsize = jnp.dtype(q.dtype).itemsize
    scale = 1.0 / math.sqrt(D)

    vmem_cap, multi_tc = _chip_info()

    # --- Sequence tiling (pad instead of monolithic fallback). ---
    if seq_tile is not None:
        assert S % int(seq_tile) == 0, "seq_tile must divide S"
        tq = tk = int(seq_tile)
        S_pad = S
    else:
        tq, S_pad = _choose_seq_tiles(S, vmem_cap)
        tk = tq
    padded = S_pad != S
    num_q = S_pad // tq
    num_k = S_pad // tk
    flash = num_k > 1

    qf = q.reshape(BH, S, D)
    kf = k.reshape(BH, S, D)
    vf = v.reshape(BH, S, D)
    if padded:
        pad = ((0, 0), (0, S_pad - S), (0, 0))
        qf = jnp.pad(qf, pad)
        kf = jnp.pad(kf, pad)
        vf = jnp.pad(vf, pad)

    # --- Mask classification: never materialize (B*H, S, S) f32 unless truly per-(b,h). ---
    mask_mode = None
    mask_arr = None
    mask_itemsize = 0
    if mask is not None:
        m = jnp.asarray(mask)
        bshape = jnp.broadcast_shapes(m.shape, (1, 1, S, S))
        mb, mh = int(bshape[0]), int(bshape[1])
        m4 = jnp.broadcast_to(m, (mb, mh, S, S))
        if mb == 1 and mh == 1:
            mask_mode = "shared"                       # single resident (S, S) f32 tile
            mask_arr = m4.reshape(S, S).astype(jnp.float32)
        elif mb == B and mh == 1 and H > 1:
            mask_mode = "batch"                        # (B, S, S) f32, indexed by g//gpb
            mask_arr = m4.reshape(B, S, S).astype(jnp.float32)
        elif mb == 1 and mh == H and B > 1:
            mask_mode = "head"                         # (H, S, S) f32, indexed by g%gpb
            mask_arr = m4.reshape(H, S, S).astype(jnp.float32)
        else:
            mask_mode = "full"                         # genuinely per-(b,h): stream in bf16
            # bf16 halves mask HBM traffic; exact for the usual 0 / -1e9 additive masks.
            mask_arr = jnp.broadcast_to(m4, (B, H, S, S)).reshape(BH, S, S).astype(jnp.bfloat16)
        mask_arr = _pad_last2(mask_arr, S, S_pad)
        mask_itemsize = jnp.dtype(mask_arr.dtype).itemsize

    # --- Head-group size G: budgeted per-step VMEM (incl. f32 temps), generation aware. ---
    budget = (28 << 20) if vmem_cap >= (96 << 20) else (18 << 20)
    per_step_fn = lambda G: _per_step_vmem_bytes(
        G, tq, tk, D, itemsize, mask_mode, mask_itemsize, flash)
    G = _pick_head_group(
        BH, H, per_step_fn, budget,
        require_divides_h=mask_mode in ("batch", "head"),
        reserve_parallel=(multi_tc and num_q == 1))
    num_groups = BH // G
    gpb = (H // G) if (mask_mode in ("batch", "head")) else 1

    kernel = _make_kernel(mask_mode, scale, flash,
                          S if (padded and flash) else None, tk, use_bf16_matmul)

    # --- BlockSpecs. ---
    if flash:
        grid = (num_groups, num_q, num_k)
        dims = ("parallel", "parallel", "arbitrary")
        q_spec = pl.BlockSpec((G, tq, D), lambda g, qi, ki: (g, qi, 0))
        kv_spec = pl.BlockSpec((G, tk, D), lambda g, qi, ki: (g, ki, 0))
        out_spec = pl.BlockSpec((G, tq, D), lambda g, qi, ki: (g, qi, 0))
        scratch_shapes = [
            pltpu.VMEM((G, tq, 1), jnp.float32),   # running row max
            pltpu.VMEM((G, tq, 1), jnp.float32),   # running softmax denominator
            pltpu.VMEM((G, tq, D), jnp.float32),   # output accumulator
        ]
        if mask_mode == "shared":
            m_spec = pl.BlockSpec((tq, tk), lambda g, qi, ki: (qi, ki))
        elif mask_mode == "batch":
            m_spec = pl.BlockSpec((None, tq, tk), lambda g, qi, ki: (g // gpb, qi, ki))
        elif mask_mode == "head":
            m_spec = pl.BlockSpec((G, tq, tk), lambda g, qi, ki: (g % gpb, qi, ki))
        elif mask_mode == "full":
            m_spec = pl.BlockSpec((G, tq, tk), lambda g, qi, ki: (g, qi, ki))
        else:
            m_spec = None
    else:
        grid = (num_groups, num_q)
        dims = ("parallel", "parallel")
        q_spec = pl.BlockSpec((G, tq, D), lambda g, qi: (g, qi, 0))
        kv_spec = pl.BlockSpec((G, tk, D), lambda g, qi: (g, 0, 0))
        out_spec = pl.BlockSpec((G, tq, D), lambda g, qi: (g, qi, 0))
        scratch_shapes = []
        if mask_mode == "shared":
            m_spec = pl.BlockSpec((tq, tk), lambda g, qi: (qi, 0))
        elif mask_mode == "batch":
            m_spec = pl.BlockSpec((None, tq, tk), lambda g, qi: (g // gpb, qi, 0))
        elif mask_mode == "head":
            m_spec = pl.BlockSpec((G, tq, tk), lambda g, qi: (g % gpb, qi, 0))
        elif mask_mode == "full":
            m_spec = pl.BlockSpec((G, tq, tk), lambda g, qi: (g, qi, 0))
        else:
            m_spec = None

    in_specs = [q_spec, kv_spec, kv_spec]
    inputs = [qf, kf, vf]
    if mask_mode is not None:
        in_specs.append(m_spec)
        inputs.append(mask_arr)

    # --- Scoped-VMEM limit: sized from the per-step estimate, capped by physical VMEM. ---
    per_step = per_step_fn(G)
    hard_cap = int(max(vmem_cap - (12 << 20), 16 << 20))
    vmem_limit = int(min(max(per_step + (4 << 20), 32 << 20), hard_cap))

    mask_bytes = int(mask_arr.size) * mask_itemsize if mask_arr is not None else 0
    cost = pl.CostEstimate(
        flops=4 * BH * S_pad * S_pad * D,
        transcendentals=BH * S_pad * S_pad,
        bytes_accessed=4 * BH * S_pad * D * itemsize + mask_bytes,
    )

    out = pl.pallas_call(
        kernel,
        out_shape=jax.ShapeDtypeStruct((BH, S_pad, D), q.dtype),
        grid=grid,
        in_specs=in_specs,
        out_specs=out_spec,
        scratch_shapes=scratch_shapes,
        compiler_params=pltpu.CompilerParams(
            dimension_semantics=dims,
            vmem_limit_bytes=vmem_limit,
        ),
        cost_estimate=cost,
    )(*inputs)

    if padded:
        out = out[:, :S, :]
    return out.reshape(B, H, S, D)


def _reference_attention(q, k, v, mask=None):
    d_k = q.shape[-1]
    scores = jnp.einsum(
        "bhqd,bhkd->bhqk", q.astype(jnp.float32), k.astype(jnp.float32)
    ) / math.sqrt(d_k)
    if mask is not None:
        scores = scores + mask.astype(jnp.float32)
    attn = jax.nn.softmax(scores, axis=-1)
    return jnp.einsum("bhqk,bhkd->bhqd", attn.astype(v.dtype), v).astype(q.dtype)


if __name__ == "__main__":
    B, H, S, D = 2, 2, 8, 32
    key = jax.random.PRNGKey(0)
    kq, kk, kv_, km, kb = jax.random.split(key, 5)

    q = jax.random.normal(kq, (B, H, S, D), dtype=jnp.float32)
    k = jax.random.normal(kk, (B, H, S, D), dtype=jnp.float32)
    v = jax.random.normal(kv_, (B, H, S, D), dtype=jnp.float32)

    # Shared additive causal mask (0 on/below diagonal, -1e9 above), broadcast over B, H.
    causal = jnp.where(
        jnp.arange(S)[:, None] >= jnp.arange(S)[None, :], 0.0, -1e9
    ).astype(jnp.float32)[None, None, :, :]
    # Per-batch (B,1,S,S) and per-(batch,head) (B,H,S,S) additive masks.
    per_batch = -1e9 * (jax.random.uniform(kb, (B, 1, S, S)) < 0.25).astype(jnp.float32)
    per_head = -1e9 * (jax.random.uniform(km, (B, H, S, S)) < 0.25).astype(jnp.float32)

    for name, m in (("no_mask", None), ("shared_mask", causal),
                    ("per_batch_mask", per_batch), ("per_head_mask", per_head)):
        out = scaled_dot_product_attention(q, k, v, mask=m)
        jax.block_until_ready(out)
        ref = _reference_attention(q, k, v, mask=m)
        assert jnp.allclose(out, ref, atol=2e-3, rtol=2e-3), name

    # Exercise the multi-KV-tile flash (online-softmax) path with a shared causal mask.
    B2, H2, S2, D2 = 1, 2, 256, 32
    k2q, k2k, k2v = jax.random.split(jax.random.PRNGKey(0), 3)
    q2 = jax.random.normal(k2q, (B2, H2, S2, D2), dtype=jnp.float32)
    k2 = jax.random.normal(k2k, (B2, H2, S2, D2), dtype=jnp.float32)
    v2 = jax.random.normal(k2v, (B2, H2, S2, D2), dtype=jnp.float32)
    causal2 = jnp.where(
        jnp.arange(S2)[:, None] >= jnp.arange(S2)[None, :], 0.0, -1e9
    ).astype(jnp.float32)[None, None, :, :]
    out2 = scaled_dot_product_attention(q2, k2, v2, mask=causal2, seq_tile=128)
    jax.block_until_ready(out2)
    ref2 = _reference_attention(q2, k2, v2, mask=causal2)
    assert jnp.allclose(out2, ref2, atol=2e-3, rtol=2e-3), "flash_path"

    print("KERNEL_OK")
</pallas_src>

<mosaic_0001>
module attributes {stable_mosaic.version = 11 : i64} {
  func.func @kernel(%arg0: i32, %arg1: i32, %arg2: memref<4x8x32xf32, #tpu.memory_space<vmem>>, %arg3: memref<4x8x32xf32, #tpu.memory_space<vmem>>, %arg4: memref<4x8x32xf32, #tpu.memory_space<vmem>>, %arg5: memref<4x8x32xf32, #tpu.memory_space<vmem>>) attributes {dimension_semantics = [#tpu.dimension_semantics<parallel>, #tpu.dimension_semantics<parallel>], iteration_bounds = array<i64: 1, 1>, scalar_prefetch = 0 : i64, scratch_operands = 0 : i64, tpu.core_type = #tpu.core_type<tc>, window_params = [{transform_indices = @transform_0, window_bounds = array<i64: 4, 8, 32>}, {transform_indices = @transform_1, window_bounds = array<i64: 4, 8, 32>}, {transform_indices = @transform_2, window_bounds = array<i64: 4, 8, 32>}, {transform_indices = @transform_3, window_bounds = array<i64: 4, 8, 32>}]} {
    %c0 = arith.constant 0 : index
    %c0_0 = arith.constant 0 : index
    %c0_1 = arith.constant 0 : index
    %0 = vector.load %arg2[%c0, %c0_0, %c0_1] : memref<4x8x32xf32, #tpu.memory_space<vmem>>, vector<4x8x32xf32>
    %cst = arith.constant 0.176776692 : f32
    %1 = vector.broadcast %cst : f32 to vector<4x8x32xf32>
    %2 = arith.mulf %0, %1 : vector<4x8x32xf32>
    %c0_2 = arith.constant 0 : index
    %c0_3 = arith.constant 0 : index
    %c0_4 = arith.constant 0 : index
    %3 = vector.load %arg3[%c0_2, %c0_3, %c0_4] : memref<4x8x32xf32, #tpu.memory_space<vmem>>, vector<4x8x32xf32>
    %c0_5 = arith.constant 0 : index
    %c0_6 = arith.constant 0 : index
    %c0_7 = arith.constant 0 : index
    %4 = vector.load %arg4[%c0_5, %c0_6, %c0_7] : memref<4x8x32xf32, #tpu.memory_space<vmem>>, vector<4x8x32xf32>
    "tpu.trace_start"() <{level = 10 : i32, message = "gqd,gkd->gqk"}> : () -> ()
    %cst_8 = arith.constant dense<0.000000e+00> : vector<4x8x8xf32>
    %5 = tpu.matmul %2, %3, %cst_8 {dimension_numbers = #tpu.dot_dimension_numbers<[2], [2], [1], [1], [0, 0, 0, 1, 1, 1], [0], [0]>} : vector<4x8x32xf32>, vector<4x8x32xf32>, vector<4x8x8xf32> -> vector<4x8x8xf32>
    "tpu.trace_stop"() : () -> ()
    %cst_9 = arith.constant dense<0xFF800000> : vector<4x8xf32>
    %6 = vector.multi_reduction <maximumf>, %5, %cst_9 [2] : vector<4x8x8xf32> to vector<4x8xf32>
    %7 = vector.shape_cast %6 : vector<4x8xf32> to vector<4x8x1xf32>
    %8 = vector.broadcast %7 : vector<4x8x1xf32> to vector<4x8x8xf32>
    %9 = arith.subf %5, %8 : vector<4x8x8xf32>
    %10 = math.exp %9 : vector<4x8x8xf32>
    %cst_10 = arith.constant dense<0.000000e+00> : vector<4x8xf32>
    %11 = vector.multi_reduction <add>, %10, %cst_10 [2] : vector<4x8x8xf32> to vector<4x8xf32>
    %12 = vector.shape_cast %11 : vector<4x8xf32> to vector<4x8x1xf32>
    "tpu.trace_start"() <{level = 10 : i32, message = "gqk,gkd->gqd"}> : () -> ()
    %cst_11 = arith.constant dense<0.000000e+00> : vector<4x8x32xf32>
    %13 = tpu.matmul %10, %4, %cst_11 {dimension_numbers = #tpu.dot_dimension_numbers<[2], [1], [1], [2], [0, 0, 0, 1, 1, 2], [0], [0]>} : vector<4x8x8xf32>, vector<4x8x32xf32>, vector<4x8x32xf32> -> vector<4x8x32xf32>
    "tpu.trace_stop"() : () -> ()
    %14 = tpu.reciprocal %12 {approx = true} : vector<4x8x1xf32> -> vector<4x8x1xf32>
    %15 = arith.mulf %12, %14 : vector<4x8x1xf32>
    %cst_12 = arith.constant 2.000000e+00 : f32
    %16 = vector.broadcast %cst_12 : f32 to vector<4x8x1xf32>
    %17 = arith.subf %16, %15 : vector<4x8x1xf32>
    %18 = arith.mulf %14, %17 : vector<4x8x1xf32>
    %19 = vector.broadcast %18 : vector<4x8x1xf32> to vector<4x8x32xf32>
    %20 = arith.mulf %13, %19 : vector<4x8x32xf32>
    %c0_13 = arith.constant 0 : index
    %c0_14 = arith.constant 0 : index
    %c0_15 = arith.constant 0 : index
    %21 = vector.load %arg5[%c0_13, %c0_14, %c0_15] : memref<4x8x32xf32, #tpu.memory_space<vmem>>, vector<4x8x32xf32>
    tpu.vector_store %arg5[%c0_13, %c0_14, %c0_15], %20 {strides = array<i32>} : memref<4x8x32xf32, #tpu.memory_space<vmem>>, vector<4x8x32xf32>,
    return
  }
  func.func @transform_0(%arg0: i32, %arg1: i32) -> (i32, i32, i32) {
    %c0_i32 = arith.constant 0 : i32
    %c0_i32_0 = arith.constant 0 : i32
    return %arg0, %arg1, %c0_i32 : i32, i32, i32
  }
  func.func @transform_1(%arg0: i32, %arg1: i32) -> (i32, i32, i32) {
    %c0_i32 = arith.constant 0 : i32
    %c0_i32_0 = arith.constant 0 : i32
    %c0_i32_1 = arith.constant 0 : i32
    return %arg0, %c0_i32, %c0_i32_0 : i32, i32, i32
  }
  func.func @transform_2(%arg0: i32, %arg1: i32) -> (i32, i32, i32) {
    %c0_i32 = arith.constant 0 : i32
    %c0_i32_0 = arith.constant 0 : i32
    %c0_i32_1 = arith.constant 0 : i32
    return %arg0, %c0_i32, %c0_i32_0 : i32, i32, i32
  }
  func.func @transform_3(%arg0: i32, %arg1: i32) -> (i32, i32, i32) {
    %c0_i32 = arith.constant 0 : i32
    %c0_i32_0 = arith.constant 0 : i32
    return %arg0, %arg1, %c0_i32 : i32, i32, i32
  }
}

</mosaic_0001>

<bundles_post_ra>
// kernel: tpu_custom_call.1
= control target key start
LH: loop header
LB: loop body
LE: loop exit
PB: predicated region body
PF: predicated region fallthrough
CT: control target
= control target key end

     0   :  { %8 = vsyncpa [#allocation3], 0  ;;  %s1026_s0 = inlined_call_operand.hbm [shape: f32[4,8,32], index: 0, kind: input, shape index: {}]   ;;  %s1027_s1 = inlined_call_operand.hbm [shape: f32[4,8,32], index: 1, kind: input, shape index: {}]   ;;  %s1028_s2 = inlined_call_operand.hbm [shape: f32[4,8,32], index: 2, kind: input, shape index: {}]   ;;  %s1029_s3 = inlined_call_operand.hbm [shape: f32[4,8,32], index: 3, kind: output, shape index: {}]  }
   0x1   :  { %9 = vsyncpa [#allocation6], 0 }
   0x2   :  { %10 = vsyncpa [#allocation4], 0  ;;  %s926_s12 = smov [#allocation5]   ;;  %s927_s14 = smov [#allocation2]  }
   0x3   :  { %s28_s13 = sshll.u32 %s926_s12, 4  ;;  %s16_s15 = sshll.u32 %s927_s14, 4  ;;  %s29_s13 = int_to_ptr.vmem [resolvable:$true] %s28_s13  ;;  %s17_s15 = int_to_ptr.vmem [resolvable:$true] %s16_s15 }
   0x4   :  { %s848_s16 = scalar_lea.vmem %s29_s13, 512  ;;  %p853_p1 = scmp.lt.s32.totalorder %s29_s13, %s29_s13 }
   0x5   :  { %p849_p0 = scmp.ne.s32.totalorder %s29_s13, %s848_s16  ;;  %p854_p2 = scmp.lt.s32.totalorder %s848_s16, %s848_s16 }
   0x7   :  { %p855_p3 = por %p854_p2, %p853_p1 }
   0x9   :  { %p856_p4 = pnand %p855_p3, %p849_p0 }
   0xb   :  { %859 = shalt.err (!%p856_p4)
}
   0xc   :  { %s928_s17 = smov 128   ;;  %s929_s18 = smov 8  }
   0xd   :  { %34 = dma.hbm_to_vmem [thread:$0]  %s1027_s1, 512, %s29_s13, [#allocation6], %s928_s17, %s928_s17, %s929_s18  }
   0xe   :  { %s868_s21 = scalar_lea.vmem %s17_s15, 512  ;;  %p873_p6 = scmp.lt.s32.totalorder %s17_s15, %s17_s15 }
   0xf   :  { %p869_p5 = scmp.ne.s32.totalorder %s17_s15, %s868_s21  ;;  %p874_p7 = scmp.lt.s32.totalorder %s868_s21, %s868_s21 }
  0x11   :  { %p875_p8 = por %p874_p7, %p873_p6 }
  0x13   :  { %p876_p9 = pnand %p875_p8, %p869_p5 }
  0x15   :  { %879 = shalt.err (!%p876_p9)
}
  0x16   :  { %22 = dma.hbm_to_vmem [thread:$0]  %s1026_s0, 512, %s17_s15, [#allocation3], %s928_s17, %s928_s17, %s929_s18  }
  0x17   :  { %s930_s24 = smov [#allocation7]  }
  0x18   :  { %s40_s25 = sshll.u32 %s930_s24, 4  ;;  %s41_s25 = int_to_ptr.vmem [resolvable:$true] %s40_s25 }
  0x19   :  { %s888_s26 = scalar_lea.vmem %s41_s25, 512  ;;  %p893_p11 = scmp.lt.s32.totalorder %s41_s25, %s41_s25 }
  0x1a   :  { %p889_p10 = scmp.ne.s32.totalorder %s41_s25, %s888_s26  ;;  %p894_p12 = scmp.lt.s32.totalorder %s888_s26, %s888_s26 }
  0x1c   :  { %p895_p13 = por %p894_p12, %p893_p11 }
  0x1e   :  { %p896_p0 = pnand %p895_p13, %p889_p10 }
  0x20   :  { %899 = shalt.err (!%p896_p0)
}
  0x21   :  { %46 = dma.hbm_to_vmem [thread:$0]  %s1028_s2, 512, %s41_s25, [#allocation6], %s928_s17, %s928_s17, %s929_s18  }
  0x22   :  { %920 = dma.done.wait [#allocation3], 512  }
  0x23   :  { %921 = vsyncadd [#allocation3], 4294966784 }
  0x24   :  { %922 = dma.done.wait [#allocation6], 1024  }
  0x25   :  { %923 = vsyncadd [#allocation6], 4294966272  ;;  %v931_v0 = vmov 0.0   ;;  %vm932_vm0 = vmmov 0   ;;  %vm72_vm1 = vcmask 261120   ;;  %v64_v1 = vld [vmem:[#allocation5] sm:$0xff] }
  0x26   :  { %776 = vmatprep.subr.mxu0 %v931_v0  ;;  %778 = vmatprep.mubr.msk.f32.mxu0 %vm932_vm0, %v931_v0  ;;  %v56_v2 = vld [vmem:[#allocation2] sm:$0xff]  ;;  %v65_v3 = vld [vmem:[#allocation5 + $0x8] sm:$0xff]  ;;  %v58_v6 = vld [vmem:[#allocation2 + $0x10] sm:$0xff]  ;;  %vm377_vm2 = vcmask 64512   ;;  %s933_s0 = smov [#allocation8]  }
  0x27   :  { %781 = vmatprep.subr.mxu1 %v931_v0  ;;  %783 = vmatprep.mubr.msk.f32.mxu1 %vm932_vm0, %v931_v0  ;;  %v60_v4 = vmul.f32 0.17677669, %v56_v2  ;;  %v57_v5 = vld [vmem:[#allocation2 + $0x8] sm:$0xff]  ;;  %v66_v7 = vld [vmem:[#allocation5 + $0x10] sm:$0xff]  ;;  %v59_v9 = vld [vmem:[#allocation2 + $0x18] sm:$0xff]  ;;  %s735_s2 = sshll.u32 %s933_s0, 4  ;;  %s736_s2 = int_to_ptr.vmem [resolvable:$true] %s735_s2 }
  0x28   :  { %777 = vmatpush3.xpose.msk.msra.mxu0 %vm72_vm1, %v64_v1  ;;  %782 = vmatpush3.xpose.msk.msra.mxu1 %vm72_vm1, %v65_v3  ;;  %v61_v8 = vmul.f32 0.17677669, %v57_v5  ;;  %v67_v10 = vld [vmem:[#allocation5 + $0x18] sm:$0xff]  ;;  %v62_v11 = vmul.f32 0.17677669, %v58_v6  ;;  %v68_v25 = vld [vmem:[#allocation7] sm:$0xff]  ;;  %p905_p2 = scmp.lt.s32.totalorder %s736_s2, %s736_s2 }
  0x29   :  { %786 = vmatprep.subr.mxu0 %v931_v0  ;;  %791 = vmatprep.subr.mxu1 %v931_v0  ;;  %v63_v12 = vmul.f32 0.17677669, %v59_v9  ;;  %v69_v26 = vld [vmem:[#allocation7 + $0x8] sm:$0xff]  ;;  %v70_v39 = vld [vmem:[#allocation7 + $0x10] sm:$0xff]  ;;  %v71_v42 = vld [vmem:[#allocation7 + $0x18] sm:$0xff]  ;;  %s900_s28 = scalar_lea.vmem %s736_s2, 512 }
  0x2a   :  { %p901_p1 = scmp.ne.s32.totalorder %s736_s2, %s900_s28  ;;  %p906_p3 = scmp.lt.s32.totalorder %s900_s28, %s900_s28 }
  0x2b   :  { %779 = vmatmul.mubr.msk.f32.vlgmr.msra.gmra.mxu0 %vm72_vm1, %v60_v4  ;;  %784 = vmatmul.mubr.msk.f32.vlgmr.msra.gmra.mxu1 %vm72_vm1, %v61_v8 }
  0x2c   :  { %787 = vmatpush3.xpose.msk.msra.mxu0 %vm72_vm1, %v66_v7  ;;  %788 = vmatprep.mubr.msk.f32.mxu0 %vm932_vm0, %v931_v0  ;;  %p907_p4 = por %p906_p3, %p905_p2 }
  0x2d   :  { %792 = vmatpush3.xpose.msk.msra.mxu1 %vm72_vm1, %v67_v10  ;;  %793 = vmatprep.mubr.msk.f32.mxu1 %vm932_vm0, %v931_v0 }
  0x2e   :  { %796 = vmatprep.subr.mxu0 %v931_v0  ;;  %801 = vmatprep.subr.mxu1 %v931_v0  ;;  %p908_p5 = pnand %p907_p4, %p901_p1 }
  0x2f   :  { %789 = vmatmul.mubr.msk.f32.vlgmr.msra.gmra.mxu0 %vm72_vm1, %v62_v11 }
  0x30   :  { %794 = vmatmul.mubr.msk.f32.vlgmr.msra.gmra.mxu1 %vm72_vm1, %v63_v12  ;;  %798 = vmatprep.mubr.msk.f32.mxu0 %vm932_vm0, %v931_v0 }
  0x31   :  { %803 = vmatprep.mubr.msk.f32.mxu1 %vm932_vm0, %v931_v0  ;;  %797 = vmatpush3.msra.mxu0 %v68_v25 }
  0x32   :  { %806 = vmatprep.subr.mxu0 %v931_v0  ;;  %802 = vmatpush3.msra.mxu1 %v69_v26 }
  0x33   :  { %811 = vmatprep.subr.mxu1 %v931_v0 }
  0xeb   :  { %v145_v13 = vpop.f32.mrf.mxu0  ;;  %v221_v14 = vpop.f32.mrf.mxu1 }
  0xec   :  { %v378_v15 = vsel %vm377_vm2, %v145_v13, -inf  ;;  %v381_v18 = vsel %vm377_vm2, %v221_v14, -inf }
  0xed   :  { %379 = vmax.xlane.f32.xlu0 %v378_v15  ;;  %v780_v16 = vpop.f32.mrf.mxu0  ;;  %v785_v17 = vpop.f32.mrf.mxu1 }
  0xef   :  { %v297_v19 = vpop.f32.mrf.mxu0 }
  0xf0   :  { %v384_v20 = vsel %vm377_vm2, %v297_v19, -inf  ;;  %v373_v21 = vpop.f32.mrf.mxu1 }
  0xf1   :  { %382 = vmax.xlane.f32.xlu0 %v381_v18  ;;  %385 = vmax.xlane.f32.xlu1 %v384_v20  ;;  %v790_v22 = vpop.f32.mrf.mxu0  ;;  %v387_v24 = vsel %vm377_vm2, %v373_v21, -inf }
  0xf2   :  { %v795_v23 = vpop.f32.mrf.mxu1 }
  0xf5   :  { %388 = vmax.xlane.f32.xlu1 %v387_v24 }
 0x176   :  { %v380_v27 = vpop.xlane.xlu0 %379 }
 0x177   :  { %v390_v28 = vsub.f32 %v145_v13, %v380_v27 }
 0x179   :  { %v394_v29 = vmul.f32 1.442695, %v390_v28 }
 0x17a   :  { %v383_v30 = vpop.xlane.xlu0 %382  ;;  %v386_v31 = vpop.xlane.xlu1 %385 }
 0x17b   :  { %824 = vpow2.f32 %v394_v29  ;;  %v391_v32 = vsub.f32 %v221_v14, %v383_v30  ;;  %v392_v33 = vsub.f32 %v297_v19, %v386_v31 }
 0x17d   :  { %v396_v34 = vmul.f32 1.442695, %v391_v32  ;;  %v398_v35 = vmul.f32 1.442695, %v392_v33 }
 0x17e   :  { %v389_v36 = vpop.xlane.xlu1 %388 }
 0x17f   :  { %826 = vpow2.f32 %v396_v34  ;;  %v393_v37 = vsub.f32 %v373_v21, %v389_v36 }
 0x180   :  { %828 = vpow2.f32 %v398_v35 }
 0x181   :  { %v400_v38 = vmul.f32 1.442695, %v393_v37 }
 0x183   :  { %830 = vpow2.f32 %v400_v38 }
 0x188   :  { %v825_v40 = vpop.eup %824 }
 0x189   :  { %799 = vmatmul.mubr.msk.f32.vlgmr.msra.gmra.mxu0 %vm377_vm2, %v825_v40  ;;  %v402_v41 = vsel %vm377_vm2, %v825_v40, 0.0 }
 0x18a   :  { %403 = vadd.xlane.f32.xlu0 %v402_v41  ;;  %807 = vmatpush3.msra.mxu0 %v70_v39 }
 0x18b   :  { %808 = vmatprep.mubr.msk.f32.mxu0 %vm932_vm0, %v931_v0 }
 0x18c   :  { %v827_v43 = vpop.eup %826 }
 0x18d   :  { %v829_v44 = vpop.eup %828  ;;  %804 = vmatmul.mubr.msk.f32.vlgmr.msra.gmra.mxu1 %vm377_vm2, %v827_v43  ;;  %v405_v45 = vsel %vm377_vm2, %v827_v43, 0.0 }
 0x18e   :  { %809 = vmatmul.mubr.msk.f32.vlgmr.msra.gmra.mxu0 %vm377_vm2, %v829_v44  ;;  %812 = vmatpush3.msra.mxu1 %v71_v42  ;;  %v408_v46 = vsel %vm377_vm2, %v829_v44, 0.0 }
 0x18f   :  { %406 = vadd.xlane.f32.xlu1 %v405_v45  ;;  %409 = vadd.xlane.f32.xlu0 %v408_v46 }
 0x190   :  { %v831_v47 = vpop.eup %830  ;;  %813 = vmatprep.mubr.msk.f32.mxu1 %vm932_vm0, %v931_v0 }
 0x191   :  { %814 = vmatmul.mubr.msk.f32.vlgmr.msra.gmra.mxu1 %vm377_vm2, %v831_v47  ;;  %v411_v48 = vsel %vm377_vm2, %v831_v47, 0.0 }
 0x193   :  { %412 = vadd.xlane.f32.xlu1 %v411_v48 }
 0x213   :  { %v404_v49 = vpop.xlane.xlu0 %403 }
 0x214   :  { %832 = vrcp.f32 %v404_v49 }
 0x218   :  { %v407_v50 = vpop.xlane.xlu1 %406  ;;  %v410_v51 = vpop.xlane.xlu0 %409 }
 0x219   :  { %834 = vrcp.f32 %v407_v50 }
 0x21a   :  { %836 = vrcp.f32 %v410_v51 }
 0x21c   :  { %v413_v52 = vpop.xlane.xlu1 %412 }
 0x21d   :  { %838 = vrcp.f32 %v413_v52 }
 0x221   :  { %v833_v53 = vpop.eup %832 }
 0x222   :  { %v710_v54 = vmul.f32 %v833_v53, %v404_v49 }
 0x224   :  { %v714_v57 = vsub.f32 2.0, %v710_v54 }
 0x226   :  { %v835_v55 = vpop.eup %834  ;;  %v718_v63 = vmul.f32 %v833_v53, %v714_v57 }
 0x227   :  { %v837_v56 = vpop.eup %836  ;;  %v711_v58 = vmul.f32 %v835_v55, %v407_v50 }
 0x228   :  { %v712_v60 = vmul.f32 %v837_v56, %v410_v51 }
 0x229   :  { %v715_v61 = vsub.f32 2.0, %v711_v58 }
 0x22a   :  { %v839_v59 = vpop.eup %838  ;;  %v716_v0 = vsub.f32 2.0, %v712_v60 }
 0x22b   :  { %v713_v62 = vmul.f32 %v839_v59, %v413_v52  ;;  %v719_v5 = vmul.f32 %v835_v55, %v715_v61 }
 0x22c   :  { %v720_v7 = vmul.f32 %v837_v56, %v716_v0 }
 0x22d   :  { %v717_v4 = vsub.f32 2.0, %v713_v62 }
 0x22f   :  { %v721_v13 = vmul.f32 %v839_v59, %v717_v4 }
 0x249   :  { %v483_v1 = vpop.f32.mrf.mxu0 }
 0x24a   :  { %v722_v2 = vmul.f32 %v718_v63, %v483_v1 }
 0x24b   :  { %v800_v3 = vpop.f32.mrf.mxu0 }
 0x24c   :  { %726 = vst.msk [vmem:[#allocation8] sm:$0xff] %vm72_vm1, %v722_v2 }
 0x24d   :  { %v556_v6 = vpop.f32.mrf.mxu1 }
 0x24e   :  { %v723_v8 = vmul.f32 %v719_v5, %v556_v6  ;;  %v629_v9 = vpop.f32.mrf.mxu0 }
 0x24f   :  { %v724_v10 = vmul.f32 %v720_v7, %v629_v9  ;;  %v805_v11 = vpop.f32.mrf.mxu1 }
 0x250   :  { %727 = vst.msk [vmem:[#allocation8 + $0x8] sm:$0xff] %vm72_vm1, %v723_v8  ;;  %v810_v12 = vpop.f32.mrf.mxu0 }
 0x251   :  { %728 = vst.msk [vmem:[#allocation8 + $0x10] sm:$0xff] %vm72_vm1, %v724_v10  ;;  %v702_v14 = vpop.f32.mrf.mxu1 }
 0x252   :  { %v725_v15 = vmul.f32 %v721_v13, %v702_v14 }
 0x253   :  { %v815_v16 = vpop.f32.mrf.mxu1 }
 0x254   :  { %729 = vst.msk [vmem:[#allocation8 + $0x18] sm:$0xff] %vm72_vm1, %v725_v15 }
 0x255   :  { %911 = shalt.err (!%p908_p5)
}
 0x256   :  { %741 = dma.vmem_to_hbm [thread:$0]  %s736_s2, 512, %s1029_s3, [#allocation4], %s928_s17, %s928_s17, %s929_s18  }
 0x257   :  { %924 = dma.done.wait [#allocation4], 512  }
 0x258   :  { %925 = vsyncadd [#allocation4], 4294966784 }
 0x259   :  { %745 = vsyncpa [#allocation3], 1 }
 0x25a   :  { %746 = vsyncpa [#allocation6], 1 }
 0x25b   :  { %747 = vsyncpa [#allocation4], 1 }

</bundles_post_ra>
